<compile_context>
chip_gen: v5e
topology: v5e:2x2
jax: 0.10.0
libtpu: 0.0.40
codegen_flags: <defaults>
</compile_context>

<pallas_src>
import functools

import jax
import jax.numpy as jnp
from jax import lax
from jax.experimental import pallas as pl
from jax.experimental.pallas import tpu as pltpu


def mlp_kernel(x_ref, w1_ref, b1_ref, w2_ref, b2_ref, w34_ref, b34_ref, o_ref):
    x = x_ref[...]                                                    # (TM, F) f32
    h = jnp.dot(x, w1_ref[...], preferred_element_type=jnp.float32) + b1_ref[...]
    h = jnp.maximum(h, 0.0)                                           # (TM, 64)
    h = jnp.dot(h, w2_ref[...], preferred_element_type=jnp.float32) + b2_ref[...]
    h = jnp.maximum(h, 0.0)                                           # (TM, 32)
    # Fused Linear(32,16)->Linear(16,1) (dropout is identity at inference).
    # Contract w34 (1,32) against h's feature dim so the result comes out
    # lane-dense: (1, TM) with rows along lanes.
    y = lax.dot_general(w34_ref[...], h,
                        dimension_numbers=(((1,), (1,)), ((), ())),
                        preferred_element_type=jnp.float32)           # (1, TM)
    o_ref[...] = (y + b34_ref[...]).astype(o_ref.dtype)


def init_params(key, input_dim=128, n_classes=2):
    """Deterministic PyTorch-Linear-style init; weights stored as (in, out)."""
    dims = [input_dim, 64, 32, 16, n_classes - 1]
    params = []
    for i in range(4):
        key, kw, kb = jax.random.split(key, 3)
        fan_in, fan_out = dims[i], dims[i + 1]
        bound = 1.0 / jnp.sqrt(fan_in)
        w = jax.random.uniform(kw, (fan_in, fan_out), jnp.float32, -bound, bound)
        b = jax.random.uniform(kb, (1, fan_out), jnp.float32, -bound, bound)
        params.append((w, b))
    return params


def _round_up(a, b):
    return ((a + b - 1) // b) * b


@functools.partial(jax.jit, static_argnames=("tm",))
def simplest_mlp_forward(x, params, tm=2048):
    """x: (B, S, 134) float32 -> (B, S) float32."""
    (w1, b1), (w2, b2), (w3, b3), (w4, b4) = params
    B, S, F = x.shape
    input_dim = w1.shape[0]                 # 128
    pad = F - input_dim                     # 6 == the hard-coded [..., 6:] slice

    # Fold the feature slice into zero rows of w1: x[..., 6:] @ w1 == x @ w1p.
    w1p = jnp.concatenate(
        [jnp.zeros((pad, w1.shape[1]), w1.dtype), w1], axis=0)        # (F, 64)
    # Fuse Linear(32,16) -> Linear(16,1); only output column 0 is used.
    w34 = (w3 @ w4[:, :1]).T                                          # (1, 32)
    b34 = b3 @ w4[:, :1] + b4[:, :1]                                  # (1, 1)

    M = B * S
    xf = x.reshape(M, F)                    # contiguous reshape: no copy pass

    # Row tile: full (rounded-up) M when it fits a single block, else tm.
    # For best v7x megacore use, pick tm so the grid keeps >= 4-8 steps.
    mr = _round_up(M, 8)
    tm_eff = tm if mr > tm else mr
    grid = pl.cdiv(M, tm_eff)

    full = lambda i: (0, 0)                 # resident, untiled weights/biases

    out = pl.pallas_call(
        mlp_kernel,
        out_shape=jax.ShapeDtypeStruct((1, grid * tm_eff), jnp.float32),
        grid_spec=pltpu.PrefetchScalarGridSpec(
            num_scalar_prefetch=0,
            grid=(grid,),
            in_specs=[
                pl.BlockSpec((tm_eff, F), lambda i: (i, 0)),
                pl.BlockSpec(w1p.shape, full), pl.BlockSpec(b1.shape, full),
                pl.BlockSpec(w2.shape, full), pl.BlockSpec(b2.shape, full),
                pl.BlockSpec(w34.shape, full), pl.BlockSpec(b34.shape, full),
            ],
            out_specs=pl.BlockSpec((1, tm_eff), lambda i: (0, i)),
        ),
        compiler_params=pltpu.CompilerParams(
            dimension_semantics=("parallel",)),
    )(xf, w1p, b1, w2, b2, w34, b34)

    return out[0, :M].reshape(B, S)


def reference_forward(x, params):
    (w1, b1), (w2, b2), (w3, b3), (w4, b4) = params
    h = x[:, :, 6:]
    h = jnp.maximum(h @ w1 + b1[0], 0.0)
    h = jnp.maximum(h @ w2 + b2[0], 0.0)
    h = h @ w3 + b3[0]
    h = h @ w4 + b4[0]
    return h[:, :, 0]


if __name__ == "__main__":
    key = jax.random.PRNGKey(0)
    kx, kx2, kp = jax.random.split(key, 3)

    params = init_params(kp, input_dim=128, n_classes=2)

    # Small shape (single block, grid == 1).
    B, S, F = 2, 8, 134
    x = jax.random.normal(kx, (B, S, F), jnp.float32)
    out = jax.block_until_ready(simplest_mlp_forward(x, params))
    ref = reference_forward(x, params)
    assert out.shape == (B, S), out.shape
    assert jnp.allclose(out, ref, atol=1e-4, rtol=1e-4), "mismatch vs reference (small)"

    # Moderate shape exercising grid > 1 and a ragged last row block.
    B2, S2 = 4, 700                         # M = 2800 -> 2 grid steps at tm=2048
    x2 = jax.random.normal(kx2, (B2, S2, F), jnp.float32)
    out2 = jax.block_until_ready(simplest_mlp_forward(x2, params))
    ref2 = reference_forward(x2, params)
    assert out2.shape == (B2, S2), out2.shape
    assert jnp.allclose(out2, ref2, atol=1e-4, rtol=1e-4), "mismatch vs reference (tiled)"

    print("KERNEL_OK")
</pallas_src>

<mosaic_0001>
module attributes {stable_mosaic.version = 11 : i64} {
  func.func @mlp_kernel(%arg0: i32, %arg1: memref<16x134xf32, #tpu.memory_space<vmem>>, %arg2: memref<134x64xf32, #tpu.memory_space<vmem>>, %arg3: memref<1x64xf32, #tpu.memory_space<vmem>>, %arg4: memref<64x32xf32, #tpu.memory_space<vmem>>, %arg5: memref<1x32xf32, #tpu.memory_space<vmem>>, %arg6: memref<1x32xf32, #tpu.memory_space<vmem>>, %arg7: memref<1x1xf32, #tpu.memory_space<vmem>>, %arg8: memref<1x16xf32, #tpu.memory_space<vmem>>) attributes {dimension_semantics = [#tpu.dimension_semantics<parallel>], iteration_bounds = array<i64: 1>, scalar_prefetch = 0 : i64, scratch_operands = 0 : i64, tpu.core_type = #tpu.core_type<tc>, window_params = [{transform_indices = @transform_0, window_bounds = array<i64: 16, 134>}, {pipeline_mode = #tpu.pipeline_mode<synchronous>, transform_indices = @transform_1, window_bounds = array<i64: 134, 64>}, {pipeline_mode = #tpu.pipeline_mode<synchronous>, transform_indices = @transform_2, window_bounds = array<i64: 1, 64>}, {pipeline_mode = #tpu.pipeline_mode<synchronous>, transform_indices = @transform_3, window_bounds = array<i64: 64, 32>}, {pipeline_mode = #tpu.pipeline_mode<synchronous>, transform_indices = @transform_4, window_bounds = array<i64: 1, 32>}, {pipeline_mode = #tpu.pipeline_mode<synchronous>, transform_indices = @transform_5, window_bounds = array<i64: 1, 32>}, {pipeline_mode = #tpu.pipeline_mode<synchronous>, transform_indices = @transform_6, window_bounds = array<i64: 1, 1>}, {transform_indices = @transform_7, window_bounds = array<i64: 1, 16>}]} {
    %c0 = arith.constant 0 : index
    %c0_0 = arith.constant 0 : index
    %0 = vector.load %arg1[%c0, %c0_0] : memref<16x134xf32, #tpu.memory_space<vmem>>, vector<16x134xf32>
    %c0_1 = arith.constant 0 : index
    %c0_2 = arith.constant 0 : index
    %1 = vector.load %arg2[%c0_1, %c0_2] : memref<134x64xf32, #tpu.memory_space<vmem>>, vector<134x64xf32>
    %cst = arith.constant dense<0.000000e+00> : vector<16x64xf32>
    %2 = tpu.matmul %0, %1, %cst {dimension_numbers = #tpu.dot_dimension_numbers<[1], [0], [0], [1], [0, 0, 1, 1], [], []>} : vector<16x134xf32>, vector<134x64xf32>, vector<16x64xf32> -> vector<16x64xf32>
    %c0_3 = arith.constant 0 : index
    %c0_4 = arith.constant 0 : index
    %3 = vector.load %arg3[%c0_3, %c0_4] : memref<1x64xf32, #tpu.memory_space<vmem>>, vector<1x64xf32>
    %4 = vector.broadcast %3 : vector<1x64xf32> to vector<16x64xf32>
    %5 = arith.addf %2, %4 : vector<16x64xf32>
    %cst_5 = arith.constant 0.000000e+00 : f32
    %6 = vector.broadcast %cst_5 : f32 to vector<16x64xf32>
    %7 = arith.maximumf %5, %6 : vector<16x64xf32>
    %c0_6 = arith.constant 0 : index
    %c0_7 = arith.constant 0 : index
    %8 = vector.load %arg4[%c0_6, %c0_7] : memref<64x32xf32, #tpu.memory_space<vmem>>, vector<64x32xf32>
    %cst_8 = arith.constant dense<0.000000e+00> : vector<16x32xf32>
    %9 = tpu.matmul %7, %8, %cst_8 {dimension_numbers = #tpu.dot_dimension_numbers<[1], [0], [0], [1], [0, 0, 1, 1], [], []>} : vector<16x64xf32>, vector<64x32xf32>, vector<16x32xf32> -> vector<16x32xf32>
    %c0_9 = arith.constant 0 : index
    %c0_10 = arith.constant 0 : index
    %10 = vector.load %arg5[%c0_9, %c0_10] : memref<1x32xf32, #tpu.memory_space<vmem>>, vector<1x32xf32>
    %11 = vector.broadcast %10 : vector<1x32xf32> to vector<16x32xf32>
    %12 = arith.addf %9, %11 : vector<16x32xf32>
    %cst_11 = arith.constant 0.000000e+00 : f32
    %13 = vector.broadcast %cst_11 : f32 to vector<16x32xf32>
    %14 = arith.maximumf %12, %13 : vector<16x32xf32>
    %c0_12 = arith.constant 0 : index
    %c0_13 = arith.constant 0 : index
    %15 = vector.load %arg6[%c0_12, %c0_13] : memref<1x32xf32, #tpu.memory_space<vmem>>, vector<1x32xf32>
    %cst_14 = arith.constant dense<0.000000e+00> : vector<1x16xf32>
    %16 = tpu.matmul %15, %14, %cst_14 {dimension_numbers = #tpu.dot_dimension_numbers<[1], [1], [0], [0], [0, 0, 1, 0], [], []>} : vector<1x32xf32>, vector<16x32xf32>, vector<1x16xf32> -> vector<1x16xf32>
    %c0_15 = arith.constant 0 : index
    %c0_16 = arith.constant 0 : index
    %17 = vector.load %arg7[%c0_15, %c0_16] : memref<1x1xf32, #tpu.memory_space<vmem>>, vector<1x1xf32>
    %18 = vector.broadcast %17 : vector<1x1xf32> to vector<1x16xf32>
    %19 = arith.addf %16, %18 : vector<1x16xf32>
    %c0_17 = arith.constant 0 : index
    %c0_18 = arith.constant 0 : index
    %20 = vector.load %arg8[%c0_17, %c0_18] : memref<1x16xf32, #tpu.memory_space<vmem>>, vector<1x16xf32>
    tpu.vector_store %arg8[%c0_17, %c0_18], %19 {strides = array<i32>} : memref<1x16xf32, #tpu.memory_space<vmem>>, vector<1x16xf32>,
    return
  }
  func.func @transform_0(%arg0: i32) -> (i32, i32) {
    %c0_i32 = arith.constant 0 : i32
    %c0_i32_0 = arith.constant 0 : i32
    return %arg0, %c0_i32 : i32, i32
  }
  func.func @transform_1(%arg0: i32) -> (i32, i32) {
    %c0_i32 = arith.constant 0 : i32
    %c0_i32_0 = arith.constant 0 : i32
    %c0_i32_1 = arith.constant 0 : i32
    return %c0_i32, %c0_i32_0 : i32, i32
  }
  func.func @transform_2(%arg0: i32) -> (i32, i32) {
    %c0_i32 = arith.constant 0 : i32
    %c0_i32_0 = arith.constant 0 : i32
    %c0_i32_1 = arith.constant 0 : i32
    return %c0_i32, %c0_i32_0 : i32, i32
  }
  func.func @transform_3(%arg0: i32) -> (i32, i32) {
    %c0_i32 = arith.constant 0 : i32
    %c0_i32_0 = arith.constant 0 : i32
    %c0_i32_1 = arith.constant 0 : i32
    return %c0_i32, %c0_i32_0 : i32, i32
  }
  func.func @transform_4(%arg0: i32) -> (i32, i32) {
    %c0_i32 = arith.constant 0 : i32
    %c0_i32_0 = arith.constant 0 : i32
    %c0_i32_1 = arith.constant 0 : i32
    return %c0_i32, %c0_i32_0 : i32, i32
  }
  func.func @transform_5(%arg0: i32) -> (i32, i32) {
    %c0_i32 = arith.constant 0 : i32
    %c0_i32_0 = arith.constant 0 : i32
    %c0_i32_1 = arith.constant 0 : i32
    return %c0_i32, %c0_i32_0 : i32, i32
  }
  func.func @transform_6(%arg0: i32) -> (i32, i32) {
    %c0_i32 = arith.constant 0 : i32
    %c0_i32_0 = arith.constant 0 : i32
    %c0_i32_1 = arith.constant 0 : i32
    return %c0_i32, %c0_i32_0 : i32, i32
  }
  func.func @transform_7(%arg0: i32) -> (i32, i32) {
    %c0_i32 = arith.constant 0 : i32
    %c0_i32_0 = arith.constant 0 : i32
    return %c0_i32, %arg0 : i32, i32
  }
}

</mosaic_0001>

<bundles_post_ra>
// kernel: squeeze.1
= control target key start
LH: loop header
LB: loop body
LE: loop exit
PB: predicated region body
PF: predicated region fallthrough
CT: control target
= control target key end

     0   :  { %s80_s0 = inlined_call_operand.vmem [shape: f32[16], index: 0, kind: input, shape index: {}]   ;;  %s81_s1 = inlined_call_operand.hbm [shape: f32[2,8], index: 1, kind: output, shape index: {}]  }
   0x1   :  { %v5_v0 = vld [vmem:[%s80_s0] sm:$0x1] }
   0x2   :  { %2 = vsyncpa [#allocation1], 0  ;;  %6 = vst [vmem:[#allocation3] sm:$0x1] %v5_v0  ;;  %vm8_vm0 = vcmask 64512   ;;  %s62_s0 = smov 120  }
   0x3   :  { %s63_s8 = smov [#allocation0]   ;;  %s27_s1 = sshll.u32 %s81_s1, 4  ;;  %s28_s1 = int_to_ptr.hbm [resolvable:$true] %s27_s1 }
   0x4   :  { %s25_s9 = sshll.u32 %s63_s8, 4  ;;  %s26_s9 = int_to_ptr.vmem [resolvable:$true] %s25_s9 }
   0x9   :  { %v10_v1 = vld [vmem:[#allocation3] sm:$0x1]  }
   0xa   :  { %v7_v2 = vld [vmem:[#allocation3] sm:$0x1]   ;;  %11 = vrot.lane.b32.xlu0 %v10_v1, %s62_s0 }
   0xb   :  { %9 = vst.msk [vmem:[#allocation2] sm:$0x1] %vm8_vm0, %v7_v2  }
  0x7c   :  { %v12_v3 = vpop.permute.xlu0 %11  }
  0x7d   :  { %15 = vst.msk [vmem:[#allocation2 + $0x1] sm:$0x1] %vm8_vm0, %v12_v3  }
  0x84   :  { %v18_v4 = vld [vmem:[#allocation2] sm:$0x3] }
  0x85   :  { %21 = vst [vmem:[#allocation0] sm:$0x3] %v18_v4 }
  0x86   :  { %30 = dma.vmem_to_hbm [thread:$0]  %s26_s9, 32, %s28_s1, [#allocation1]  }
  0x87   :  { %60 = dma.done.wait [#allocation1], 32  }
  0x88   :  { %61 = vsyncadd [#allocation1], 4294967264 }
  0x89   :  { %33 = vsyncpa [#allocation1], 1 }

// kernel: simplest_mlp_forward.1
= control target key start
LH: loop header
LB: loop body
LE: loop exit
PB: predicated region body
PF: predicated region fallthrough
CT: control target
= control target key end

     0   :  { %vm60_vm0 = vcmask 1045504   ;;  %vm53_vm1 = vcmask 48128   ;;  %vm124_vm2 = vcmask 523264   ;;  %v212_v41 = vmov 0   ;;  %s357_s1 = inlined_call_operand.vmem [shape: f32[134,64], index: 1, kind: input, shape index: {}]   ;;  %s358_s0 = inlined_call_operand.vmem [shape: f32[16,134], index: 0, kind: input, shape index: {}]   ;;  %s359_s3 = inlined_call_operand.vmem [shape: f32[64,32], index: 3, kind: input, shape index: {}]   ;;  %s360_s2 = inlined_call_operand.vmem [shape: f32[1,64], index: 2, kind: input, shape index: {}]   ;;  %s361_s4 = inlined_call_operand.vmem [shape: f32[1,32], index: 4, kind: input, shape index: {}]   ;;  %s362_s6 = inlined_call_operand.<no memory space> [shape: f32[1,1], index: 6, kind: input, shape index: {}]   ;;  %s363_s5 = inlined_call_operand.vmem [shape: f32[1,32], index: 5, kind: input, shape index: {}]   ;;  %s364_s7 = inlined_call_operand.vmem [shape: f32[1,16], index: 7, kind: output, shape index: {}]  }
   0x1   :  { %v47_v0 = vld [vmem:[%s357_s1 + $0x78] sm:$0xff]  ;;  %v46_v1 = vld [vmem:[%s357_s1 + $0x70] sm:$0xff]  ;;  %v45_v2 = vld [vmem:[%s357_s1 + $0x68] sm:$0xff]  ;;  %v12_v40 = vstv %s362_s6  ;;  %209 = vset.pattern.permute.xlu0 %v212_v41  ;;  %vm164_vm3 = vcmask 261120   ;;  %vm194_vm4 = vcmask 122880  }
   0x2   :  { %64 = vmatpush.msra.mxu0 %v47_v0  ;;  %v44_v3 = vld [vmem:[%s357_s1 + $0x60] sm:$0xff]  ;;  %v43_v5 = vld [vmem:[%s357_s1 + $0x58] sm:$0xff]  ;;  %v29_v6 = vld [vmem:[%s358_s0 + $0x8] sm:$0xff]  ;;  %13 = vst [vmem:[#allocation2] sm:$0x1] %v12_v40 }
   0x3   :  { %v48_v4 = vld [vmem:[%s357_s1 + $0x80] sm:$0x3f]  ;;  %v42_v7 = vld [vmem:[%s357_s1 + $0x50] sm:$0xff]  ;;  %v119_v8 = vld [vmem:[%s359_s3 + $0x38] sm:$0xff] }
   0x4   :  { %65 = vmatpush.msra.mxu0 %v46_v1  ;;  %200 = vmatpush.msk.msra.mxu1 %vm60_vm0, %v48_v4  ;;  %v118_v9 = vld [vmem:[%s359_s3 + $0x30] sm:$0xff]  ;;  %v41_v10 = vld [vmem:[%s357_s1 + $0x48] sm:$0xff]  ;;  %v40_v12 = vld [vmem:[%s357_s1 + $0x40] sm:$0xff] }
   0x5   :  { %201 = vmatmul.msk.f32.vlgmr.msra.gmra.mxu1 %vm53_vm1, %v29_v6  ;;  %139 = vmatpush.msra.mxu2 %v119_v8  ;;  %v117_v11 = vld [vmem:[%s359_s3 + $0x28] sm:$0xff]  ;;  %v31_v13 = vld [vmem:[%s358_s0 + $0x18] sm:$0xff]  ;;  %v116_v14 = vld [vmem:[%s359_s3 + $0x20] sm:$0xff] }
   0x6   :  { %66 = vmatpush.msra.mxu0 %v45_v2  ;;  %v39_v15 = vld [vmem:[%s357_s1 + $0x38] sm:$0xff]  ;;  %v38_v16 = vld [vmem:[%s357_s1 + $0x30] sm:$0xff]  ;;  %v37_v17 = vld [vmem:[%s357_s1 + $0x28] sm:$0xff] }
   0x7   :  { %140 = vmatpush.msra.mxu2 %v118_v9  ;;  %v36_v18 = vld [vmem:[%s357_s1 + $0x20] sm:$0xff]  ;;  %v35_v19 = vld [vmem:[%s357_s1 + $0x18] sm:$0xff]  ;;  %v34_v20 = vld [vmem:[%s357_s1 + $0x10] sm:$0xff] }
   0x8   :  { %67 = vmatpush.msra.mxu0 %v44_v3  ;;  %v33_v21 = vld [vmem:[%s357_s1 + $0x8] sm:$0xff]  ;;  %v32_v22 = vld [vmem:[%s357_s1] sm:$0xff]  ;;  %v30_v24 = vld [vmem:[%s358_s0 + $0x10] sm:$0xff] }
   0x9   :  { %141 = vmatpush.msra.mxu2 %v117_v11  ;;  %v28_v23 = vld [vmem:[%s358_s0] sm:$0xff]  ;;  %v115_v25 = vld [vmem:[%s359_s3 + $0x18] sm:$0xff]  ;;  %v114_v26 = vld [vmem:[%s359_s3 + $0x10] sm:$0xff] }
   0xa   :  { %68 = vmatpush.msra.mxu0 %v43_v5  ;;  %v113_v27 = vld [vmem:[%s359_s3 + $0x8] sm:$0xff]  ;;  %v112_v28 = vld [vmem:[%s359_s3] sm:$0xff] }
   0xb   :  { %142 = vmatpush.msra.mxu2 %v116_v14  ;;  %v210_v29 = vld [vmem:[%s360_s2] ss:$0 sm:$0xff] }
   0xc   :  { %69 = vmatpush.msra.mxu0 %v42_v7  ;;  %v157_v42 = vld [vmem:[#allocation2] sm:$0x1] }
   0xd   :  { %202 = vmatmul.msk.f32.gmra.mxu1 %vm53_vm1, %v31_v13  ;;  %143 = vmatpush.msra.mxu2 %v115_v25  ;;  %v211_v44 = vld [vmem:[%s361_s4] ss:$0 sm:$0xff] }
   0xe   :  { %70 = vmatpush.msra.mxu0 %v41_v10  ;;  %160 = vperm.xlu0 %209, %v157_v42   ;;  %v156_v50 = vld [vmem:[%s363_s5] sm:$0x1] }
   0xf   :  { %144 = vmatpush.msra.mxu2 %v114_v26 }
  0x10   :  { %71 = vmatpush.msra.mxu0 %v40_v12 }
  0x11   :  { %145 = vmatpush.msra.mxu2 %v113_v27 }
  0x12   :  { %72 = vmatpush.msra.mxu0 %v39_v15 }
  0x13   :  { %146 = vmatpush.msra.mxu2 %v112_v28 }
  0x14   :  { %73 = vmatpush.msra.mxu0 %v38_v16 }
  0x16   :  { %74 = vmatpush.msra.mxu0 %v37_v17 }
  0x18   :  { %75 = vmatpush.msra.mxu0 %v36_v18 }
  0x1a   :  { %76 = vmatpush.msra.mxu0 %v35_v19 }
  0x1c   :  { %77 = vmatpush.msra.mxu0 %v34_v20 }
  0x1e   :  { %78 = vmatpush.msra.mxu0 %v33_v21 }
  0x20   :  { %79 = vmatpush.msra.mxu0 %v32_v22 }
  0x21   :  { %80 = vmatmul.f32.vlgmr.msra.gmra.mxu0 %v28_v23 }
  0x29   :  { %83 = vmatmul.f32.gmra.mxu0 %v30_v24 }
  0x80   :  { %v161_v51 = vpop.permute.xlu0 %160 }
  0x81   :  { %v163_v52 = vperm.slane %v161_v51, 0 }
  0x82   :  { %v104_v30 = vpop.f32.mrf.mxu1 }
  0x8a   :  { %v107_v36 = vpop.f32.mrf.mxu1 }
  0x9e   :  { %v81_v31 = vpop.f32.mrf.mxu0 }
  0x9f   :  { %v82_v32 = vadd.f32 %v210_v29, %v81_v31 }
  0xa1   :  { %v105_v33 = vadd.f32 %v104_v30, %v82_v32 }
  0xa3   :  { %v110_v34 = vmax.f32 %v105_v33, 0.0 }
  0xa5   :  { %203 = vmatmul.msk.f32.vlgmr.msra.gmra.mxu2 %vm124_vm2, %v110_v34 }
  0xa6   :  { %v84_v35 = vpop.f32.mrf.mxu0 }
  0xa7   :  { %v85_v37 = vadd.f32 %v210_v29, %v84_v35 }
  0xa9   :  { %v108_v38 = vadd.f32 %v107_v36, %v85_v37 }
  0xab   :  { %v111_v39 = vmax.f32 %v108_v38, 0.0 }
  0xad   :  { %204 = vmatmul.msk.f32.gmra.mxu2 %vm124_vm2, %v111_v39 }
 0x128   :  { %v148_v43 = vpop.f32.mrf.mxu2 }
 0x129   :  { %v149_v47 = vadd.f32 %v211_v44, %v148_v43 }
 0x12b   :  { %v154_v49 = vmax.f32 %v149_v47, 0.0 }
 0x130   :  { %v151_v45 = vpop.f32.mrf.mxu2 }
 0x131   :  { %v152_v46 = vadd.f32 %v211_v44, %v151_v45 }
 0x133   :  { %v155_v48 = vmax.f32 %v152_v46, 0.0 }
 0x135   :  { %205 = vmatpush.xpose.msk.msra.mxu3 %vm164_vm3, %v155_v48 }
 0x139   :  { %206 = vmatpush.xpose.msk.msra.mxu3 %vm164_vm3, %v154_v49 }
 0x13c   :  { %207 = vmatmul.msk.f32.vlgmr.msra.gmra.mxu3 %vm164_vm3, %v156_v50 }
 0x1bf   :  { %v191_v53 = vpop.f32.mrf.mxu3 }
 0x1c0   :  { %v192_v54 = vadd.f32 %v191_v53, %v163_v52 }
 0x1c2   :  { %195 = vst.msk [vmem:[%s364_s7] sm:$0x1] %vm194_vm4, %v192_v54 }

</bundles_post_ra>
